<compile_context>
chip_gen: v5e
topology: v5e:2x2
jax: 0.10.0
libtpu: 0.0.40
codegen_flags: <defaults>
</compile_context>

<pallas_src>
import jax
import jax.numpy as jnp
import numpy as np
from jax.experimental import pallas as pl
from jax.experimental.pallas import tpu as pltpu

# ----------------------------- model config ---------------------------------
C_IN = 4            # in_channels
C_OUT = 32          # out_channels
ATT = 32            # att_channels
N_LEN_SEG = 128     # n_len_seg
N_CLASSES = 5

K1, S1 = 16, 4
K2, S2 = 8, 2
K3, S3 = 4, 1

FEAT_IN = N_LEN_SEG * C_IN     # 512: flattened segment, (position, channel) order
LANE = 128


# ------------------------------ host helpers ---------------------------------
def _round_up(x, m):
    return (x + m - 1) // m * m


def _conv1d(x, w, b, stride, precision=None):
    y = jax.lax.conv_general_dilated(
        x, w, (stride,), "VALID",
        dimension_numbers=("NCH", "OIH", "NCH"), precision=precision)
    return y + b[None, :, None]


def fold_conv_stack(params):
    """Collapse conv1∘conv2∘conv3∘mean (all linear at inference) into one
    affine map on the flattened segment (ordered position-major, channel-minor):
        feats(32,) = seg_flat(512,) @ w_lin(512, 32) + b_eff(32,)
    Computed once on the host at HIGHEST precision (cost is negligible)."""
    hi = jax.lax.Precision.HIGHEST

    def seg_feat(seg_flat, b1, b2, b3):
        seg = seg_flat.reshape(N_LEN_SEG, C_IN).T[None]        # (1, C_IN, L_seg)
        h = _conv1d(seg, params["w1"], b1, S1, hi)
        h = _conv1d(h, params["w2"], b2, S2, hi)
        h = _conv1d(h, params["w3"], b3, S3, hi)
        return h.mean(-1)[0]                                    # (C_OUT,)

    z1 = jnp.zeros_like(params["b1"])
    z2 = jnp.zeros_like(params["b2"])
    z3 = jnp.zeros_like(params["b3"])
    b_eff = seg_feat(jnp.zeros((FEAT_IN,), jnp.float32),
                     params["b1"], params["b2"], params["b3"])  # (C_OUT,)
    eye = jnp.eye(FEAT_IN, dtype=jnp.float32)
    w_lin = jax.vmap(lambda v: seg_feat(v, z1, z2, z3))(eye)    # (FEAT_IN, C_OUT)
    return w_lin, b_eff


# ------------------- kernel A: folded conv stack (one GEMM) ------------------
def feat_kernel(x_ref, w_ref, b_ref, out_ref):
    """x_ref: (FEAT_IN, blk)  segments on the lane axis
       w_ref: (C_OUT, FEAT_IN), b_ref: (C_OUT, 1), out_ref: (C_OUT, blk)."""
    out_ref[...] = jnp.dot(w_ref[...], x_ref[...],
                           preferred_element_type=jnp.float32) + b_ref[...]


# ------------------- kernel B: attention pooling + dense head ----------------
def head_kernel(f_ref, wattT_ref, vattT_ref, gnb_ref, gbn_ref,
                wd1_ref, bd1_ref, wd2_ref, bd2_ref, out_ref):
    """Feature-major layout; pure 2D matmuls, no reshapes/transposes.

    f_ref:   (C_OUT, N)   features, segments on lanes (N = B * n_seg)
    gnb_ref: (N, B)       0/1 segment->batch membership, gbn_ref its transpose
    out_ref: (N_CLASSES, B)
    """
    fT = f_ref[...]
    t = jnp.tanh(jnp.dot(wattT_ref[...], fT,
                         preferred_element_type=jnp.float32))            # (ATT, N)
    e = jnp.dot(vattT_ref[...], t, preferred_element_type=jnp.float32)   # (1, N)
    n1 = jnp.exp(e)                                                      # (1, N)
    denom_b = jnp.dot(n1, gnb_ref[...],
                      preferred_element_type=jnp.float32)                # (1, B)
    denom = jnp.dot(denom_b, gbn_ref[...],
                    preferred_element_type=jnp.float32)                  # (1, N)
    gama = n1 / denom                                  # softmax over segments/batch
    pooledT = jnp.dot(fT * gama, gnb_ref[...],
                      preferred_element_type=jnp.float32)                # (C_OUT, B)
    # dropout -> identity (inference)
    hT = jnp.dot(wd1_ref[...], pooledT,
                 preferred_element_type=jnp.float32) + bd1_ref[...]      # (C_OUT, B)
    out_ref[...] = jnp.dot(wd2_ref[...], hT,
                           preferred_element_type=jnp.float32) + bd2_ref[...]


# --------------------------------- wrapper -----------------------------------
def acnn_forward(x, params, seg_blk=1024):
    """x: (B, C_IN, L) float32, like the torch module (N, n_channel, n_length)."""
    B, c_in, L = x.shape
    assert c_in == C_IN and L % N_LEN_SEG == 0
    n_seg = L // N_LEN_SEG
    N = B * n_seg

    # ---- host-side one-time prep (fold the conv stack into one linear map) --
    w_lin, b_eff = fold_conv_stack(params)            # (512, 32), (32,)
    w_eff_T = w_lin.T                                 # (32, 512)
    b_eff_col = b_eff[:, None]                        # (32, 1)

    # Feature-major segment layout: xT[p*C_IN + c, b*n_seg + s] = x[b, c, s*LS + p]
    x4 = x.reshape(B, C_IN, n_seg, N_LEN_SEG)
    xT = jnp.transpose(x4, (3, 1, 0, 2)).reshape(FEAT_IN, N)

    # Lane-aligned segment-block size; prefer >= 2 grid steps (v7x megacore).
    seg_blk = max(LANE, seg_blk // LANE * LANE)
    blk = min(seg_blk, _round_up(N, LANE))
    if blk > LANE and _round_up(N, blk) == blk:
        blk = _round_up(blk // 2, LANE)
    n_pad = _round_up(N, blk)
    if n_pad != N:
        xT = jnp.pad(xT, ((0, 0), (0, n_pad - N)))

    featsT = pl.pallas_call(
        feat_kernel,
        out_shape=jax.ShapeDtypeStruct((C_OUT, n_pad), jnp.float32),
        grid=(n_pad // blk,),
        in_specs=[
            pl.BlockSpec((FEAT_IN, blk), lambda i: (0, i)),
            pl.BlockSpec((C_OUT, FEAT_IN), lambda i: (0, 0)),
            pl.BlockSpec((C_OUT, 1), lambda i: (0, 0)),
        ],
        out_specs=pl.BlockSpec((C_OUT, blk), lambda i: (0, i)),
        compiler_params=pltpu.CompilerParams(
            dimension_semantics=("parallel",)),
    )(xT, w_eff_T, b_eff_col)

    featsT = featsT[:, :N]                            # drop padded segments

    # ---- attention pooling + dense head --------------------------------------
    # NOTE: feats is (C_OUT, B*n_seg) and tiny here; for very large B*n_seg this
    # single-block call should gain a batch grid / two-pass segment softmax.
    seg_batch = jnp.arange(N, dtype=jnp.int32) // n_seg
    g_nb = (seg_batch[:, None] == jnp.arange(B, dtype=jnp.int32)[None, :]
            ).astype(jnp.float32)                     # (N, B)
    g_bn = g_nb.T                                     # (B, N)

    outT = pl.pallas_call(
        head_kernel,
        out_shape=jax.ShapeDtypeStruct((N_CLASSES, B), jnp.float32),
    )(featsT, params["W_att"].T, params["v_att"].T, g_nb, g_bn,
      params["wd1"], params["bd1"][:, None],
      params["wd2"], params["bd2"][:, None])
    return outT.T                                     # (B, N_CLASSES)


# -------------------------- pure-JAX reference -------------------------------
def reference_forward(x, params):
    hi = jax.lax.Precision.HIGHEST
    B, c_in, L = x.shape
    n_seg = L // N_LEN_SEG
    out = jnp.transpose(x, (0, 2, 1)).reshape(B * n_seg, N_LEN_SEG, c_in)
    out = jnp.transpose(out, (0, 2, 1))               # (N, C, L_seg)
    h = _conv1d(out, params["w1"], params["b1"], S1, hi)
    h = _conv1d(h, params["w2"], params["b2"], S2, hi)
    h = _conv1d(h, params["w3"], params["b3"], S3, hi)
    h = h.mean(-1).reshape(B, n_seg, C_OUT)
    e = jnp.matmul(jnp.tanh(jnp.matmul(h, params["W_att"], precision=hi)),
                   params["v_att"], precision=hi)
    gama = jnp.exp(e) / jnp.sum(jnp.exp(e), axis=1, keepdims=True)
    pooled = jnp.sum(gama * h, axis=1)
    h1 = jnp.matmul(pooled, params["wd1"].T, precision=hi) + params["bd1"]
    return jnp.matmul(h1, params["wd2"].T, precision=hi) + params["bd2"]


# --------------------------------- main ---------------------------------------
def init_params(key):
    ks = jax.random.split(key, 12)
    s = 0.1
    return {
        "w1": s * jax.random.normal(ks[0], (C_OUT, C_IN, K1), jnp.float32),
        "b1": s * jax.random.normal(ks[1], (C_OUT,), jnp.float32),
        "w2": s * jax.random.normal(ks[2], (C_OUT, C_OUT, K2), jnp.float32),
        "b2": s * jax.random.normal(ks[3], (C_OUT,), jnp.float32),
        "w3": s * jax.random.normal(ks[4], (C_OUT, C_OUT, K3), jnp.float32),
        "b3": s * jax.random.normal(ks[5], (C_OUT,), jnp.float32),
        "W_att": s * jax.random.normal(ks[6], (C_OUT, ATT), jnp.float32),
        "v_att": s * jax.random.normal(ks[7], (ATT, 1), jnp.float32),
        "wd1": s * jax.random.normal(ks[8], (C_OUT, C_OUT), jnp.float32),
        "bd1": s * jax.random.normal(ks[9], (C_OUT,), jnp.float32),
        "wd2": s * jax.random.normal(ks[10], (N_CLASSES, C_OUT), jnp.float32),
        "bd2": s * jax.random.normal(ks[11], (N_CLASSES,), jnp.float32),
    }


if __name__ == "__main__":
    key = jax.random.PRNGKey(0)
    k_param, k_x = jax.random.split(key)
    params = init_params(k_param)

    B = 2
    n_seg = 2
    x = jax.random.normal(k_x, (B, C_IN, n_seg * N_LEN_SEG), jnp.float32)

    out = jax.block_until_ready(acnn_forward(x, params))
    ref = jax.block_until_ready(reference_forward(x, params))

    np.testing.assert_allclose(np.asarray(out), np.asarray(ref),
                               rtol=5e-3, atol=5e-3)
    assert out.shape == (B, N_CLASSES)
    print("KERNEL_OK")
</pallas_src>

<mosaic_0001>
module attributes {stable_mosaic.version = 11 : i64} {
  func.func @feat_kernel(%arg0: i32, %arg1: memref<512x128xf32, #tpu.memory_space<vmem>>, %arg2: memref<32x512xf32, #tpu.memory_space<vmem>>, %arg3: memref<32x1xf32, #tpu.memory_space<vmem>>, %arg4: memref<32x128xf32, #tpu.memory_space<vmem>>) attributes {dimension_semantics = [#tpu.dimension_semantics<parallel>], iteration_bounds = array<i64: 1>, scalar_prefetch = 0 : i64, scratch_operands = 0 : i64, tpu.core_type = #tpu.core_type<tc>, window_params = [{transform_indices = @transform_0, window_bounds = array<i64: 512, 128>}, {pipeline_mode = #tpu.pipeline_mode<synchronous>, transform_indices = @transform_1, window_bounds = array<i64: 32, 512>}, {pipeline_mode = #tpu.pipeline_mode<synchronous>, transform_indices = @transform_2, window_bounds = array<i64: 32, 1>}, {transform_indices = @transform_3, window_bounds = array<i64: 32, 128>}]} {
    %c0 = arith.constant 0 : index
    %c0_0 = arith.constant 0 : index
    %0 = vector.load %arg2[%c0, %c0_0] : memref<32x512xf32, #tpu.memory_space<vmem>>, vector<32x512xf32>
    %c0_1 = arith.constant 0 : index
    %c0_2 = arith.constant 0 : index
    %1 = vector.load %arg1[%c0_1, %c0_2] : memref<512x128xf32, #tpu.memory_space<vmem>>, vector<512x128xf32>
    %cst = arith.constant dense<0.000000e+00> : vector<32x128xf32>
    %2 = tpu.matmul %0, %1, %cst {dimension_numbers = #tpu.dot_dimension_numbers<[1], [0], [0], [1], [0, 0, 1, 1], [], []>} : vector<32x512xf32>, vector<512x128xf32>, vector<32x128xf32> -> vector<32x128xf32>
    %c0_3 = arith.constant 0 : index
    %c0_4 = arith.constant 0 : index
    %3 = vector.load %arg3[%c0_3, %c0_4] : memref<32x1xf32, #tpu.memory_space<vmem>>, vector<32x1xf32>
    %4 = vector.broadcast %3 : vector<32x1xf32> to vector<32x128xf32>
    %5 = arith.addf %2, %4 : vector<32x128xf32>
    %c0_5 = arith.constant 0 : index
    %c0_6 = arith.constant 0 : index
    %6 = vector.load %arg4[%c0_5, %c0_6] : memref<32x128xf32, #tpu.memory_space<vmem>>, vector<32x128xf32>
    tpu.vector_store %arg4[%c0_5, %c0_6], %5 {strides = array<i32>} : memref<32x128xf32, #tpu.memory_space<vmem>>, vector<32x128xf32>,
    return
  }
  func.func @transform_0(%arg0: i32) -> (i32, i32) {
    %c0_i32 = arith.constant 0 : i32
    %c0_i32_0 = arith.constant 0 : i32
    return %c0_i32, %arg0 : i32, i32
  }
  func.func @transform_1(%arg0: i32) -> (i32, i32) {
    %c0_i32 = arith.constant 0 : i32
    %c0_i32_0 = arith.constant 0 : i32
    %c0_i32_1 = arith.constant 0 : i32
    return %c0_i32, %c0_i32_0 : i32, i32
  }
  func.func @transform_2(%arg0: i32) -> (i32, i32) {
    %c0_i32 = arith.constant 0 : i32
    %c0_i32_0 = arith.constant 0 : i32
    %c0_i32_1 = arith.constant 0 : i32
    return %c0_i32, %c0_i32_0 : i32, i32
  }
  func.func @transform_3(%arg0: i32) -> (i32, i32) {
    %c0_i32 = arith.constant 0 : i32
    %c0_i32_0 = arith.constant 0 : i32
    return %c0_i32, %arg0 : i32, i32
  }
}

</mosaic_0001>

<bundles_post_ra>
// kernel: tpu_custom_call.1
= control target key start
LH: loop header
LB: loop body
LE: loop exit
PB: predicated region body
PF: predicated region fallthrough
CT: control target
= control target key end

     0   :  { %8 = vsyncpa [#allocation3], 0  ;;  %s434_s0 = inlined_call_operand.hbm [shape: f32[512,128], index: 0, kind: input, shape index: {}]   ;;  %s435_s1 = inlined_call_operand.hbm [shape: f32[32,512], index: 1, kind: input, shape index: {}]   ;;  %s436_s2 = inlined_call_operand.vmem [shape: f32[32,1], index: 2, kind: input, shape index: {}]   ;;  %s437_s3 = inlined_call_operand.hbm [shape: f32[32,128], index: 3, kind: output, shape index: {}]  }
   0x1   :  { %9 = vsyncpa [#allocation6], 0 }
   0x2   :  { %10 = vsyncpa [#allocation4], 0  ;;  %s15_s14 = sshll.u32 %s434_s0, 4  ;;  %s379_s15 = smov [#allocation2]   ;;  %s16_s14 = int_to_ptr.hbm [resolvable:$true] %s15_s14 }
   0x3   :  { %s17_s16 = sshll.u32 %s379_s15, 4  ;;  %s28_s19 = sshll.u32 %s435_s1, 4  ;;  %s18_s16 = int_to_ptr.vmem [resolvable:$true] %s17_s16  ;;  %s29_s19 = int_to_ptr.hbm [resolvable:$true] %s28_s19 }
   0x4   :  { %s380_s20 = smov 128   ;;  %s381_s21 = smov 8  }
   0x5   :  { %23 = dma.hbm_to_vmem [thread:$0]  %s16_s14, 8192, %s18_s16, [#allocation3], %s380_s20, %s380_s20, %s381_s21  }
   0x6   :  { %s382_s22 = smov [#allocation5]   ;;  %s383_s24 = smov 512  }
   0x7   :  { %s30_s23 = sshll.u32 %s382_s22, 4  ;;  %s384_s0 = smov 32   ;;  %s31_s23 = int_to_ptr.vmem [resolvable:$true] %s30_s23 }
   0x8   :  { %36 = dma.hbm_to_vmem [thread:$0]  %s29_s19, 2048, %s31_s23, [#allocation6], %s383_s24, %s383_s24, %s384_s0  }
   0x9   :  { %373 = dma.done.wait [#allocation3], 8192  }
   0xa   :  { %374 = vsyncadd [#allocation3], 4294959104 }
   0xb   :  { %375 = dma.done.wait [#allocation6], 2048  }
   0xc   :  { %376 = vsyncadd [#allocation6], 4294965248  ;;  %v78_v0 = vld [vmem:[#allocation2 + $0x78] sm:$0xff]  ;;  %v77_v2 = vld [vmem:[#allocation2 + $0x70] sm:$0xff]  ;;  %s277_s8 = sshll.u32 %s437_s3, 4  ;;  %s278_s8 = int_to_ptr.hbm [resolvable:$true] %s277_s8 }
   0xd   :  { %v110_v1 = vld [vmem:[#allocation2 + $0x178] sm:$0xff]  ;;  %151 = vmatpush.msra.mxu0 %v78_v0  ;;  %v109_v4 = vld [vmem:[#allocation2 + $0x170] sm:$0xff]  ;;  %v76_v6 = vld [vmem:[#allocation2 + $0x68] sm:$0xff] }
   0xe   :  { %209 = vmatpush.msra.mxu2 %v110_v1  ;;  %v94_v3 = vld [vmem:[#allocation2 + $0xf8] sm:$0xff]  ;;  %v93_v7 = vld [vmem:[#allocation2 + $0xf0] sm:$0xff]  ;;  %v108_v8 = vld [vmem:[#allocation2 + $0x168] sm:$0xff] }
   0xf   :  { %v126_v5 = vld [vmem:[#allocation2 + $0x1f8] sm:$0xff]  ;;  %180 = vmatpush.msra.mxu1 %v94_v3  ;;  %152 = vmatpush.msra.mxu0 %v77_v2  ;;  %v125_v9 = vld [vmem:[#allocation2 + $0x1f0] sm:$0xff]  ;;  %v92_v10 = vld [vmem:[#allocation2 + $0xe8] sm:$0xff] }
  0x10   :  { %238 = vmatpush.msra.mxu3 %v126_v5  ;;  %210 = vmatpush.msra.mxu2 %v109_v4  ;;  %v75_v11 = vld [vmem:[#allocation2 + $0x60] sm:$0xff]  ;;  %v124_v13 = vld [vmem:[#allocation2 + $0x1e8] sm:$0xff]  ;;  %v74_v16 = vld [vmem:[#allocation2 + $0x58] sm:$0xff] }
  0x11   :  { %181 = vmatpush.msra.mxu1 %v93_v7  ;;  %v107_v12 = vld [vmem:[#allocation2 + $0x160] sm:$0xff]  ;;  %153 = vmatpush.msra.mxu0 %v76_v6  ;;  %v106_v17 = vld [vmem:[#allocation2 + $0x158] sm:$0xff]  ;;  %v73_v20 = vld [vmem:[#allocation2 + $0x50] sm:$0xff]  ;;  %v385_v6 = vmov 0  }
  0x12   :  { %239 = vmatpush.msra.mxu3 %v125_v9  ;;  %211 = vmatpush.msra.mxu2 %v108_v8  ;;  %v91_v14 = vld [vmem:[#allocation2 + $0xe0] sm:$0xff]  ;;  %v90_v18 = vld [vmem:[#allocation2 + $0xd8] sm:$0xff]  ;;  %v105_v21 = vld [vmem:[#allocation2 + $0x150] sm:$0xff] }
  0x13   :  { %v123_v15 = vld [vmem:[#allocation2 + $0x1e0] sm:$0xff]  ;;  %182 = vmatpush.msra.mxu1 %v92_v10  ;;  %154 = vmatpush.msra.mxu0 %v75_v11  ;;  %v122_v19 = vld [vmem:[#allocation2 + $0x1d8] sm:$0xff]  ;;  %v89_v22 = vld [vmem:[#allocation2 + $0xd0] sm:$0xff] }
  0x14   :  { %240 = vmatpush.msra.mxu3 %v124_v13  ;;  %212 = vmatpush.msra.mxu2 %v107_v12  ;;  %v121_v23 = vld [vmem:[#allocation2 + $0x1d0] sm:$0xff]  ;;  %v72_v24 = vld [vmem:[#allocation2 + $0x48] sm:$0xff]  ;;  %v71_v28 = vld [vmem:[#allocation2 + $0x40] sm:$0xff] }
  0x15   :  { %183 = vmatpush.msra.mxu1 %v91_v14  ;;  %155 = vmatpush.msra.mxu0 %v74_v16  ;;  %v104_v25 = vld [vmem:[#allocation2 + $0x148] sm:$0xff]  ;;  %v103_v29 = vld [vmem:[#allocation2 + $0x140] sm:$0xff]  ;;  %v70_v32 = vld [vmem:[#allocation2 + $0x38] sm:$0xff] }
  0x16   :  { %241 = vmatpush.msra.mxu3 %v123_v15  ;;  %213 = vmatpush.msra.mxu2 %v106_v17  ;;  %v88_v26 = vld [vmem:[#allocation2 + $0xc8] sm:$0xff]  ;;  %v87_v30 = vld [vmem:[#allocation2 + $0xc0] sm:$0xff]  ;;  %v102_v33 = vld [vmem:[#allocation2 + $0x138] sm:$0xff] }
  0x17   :  { %184 = vmatpush.msra.mxu1 %v90_v18  ;;  %156 = vmatpush.msra.mxu0 %v73_v20  ;;  %v120_v27 = vld [vmem:[#allocation2 + $0x1c8] sm:$0xff]  ;;  %v119_v31 = vld [vmem:[#allocation2 + $0x1c0] sm:$0xff]  ;;  %v86_v34 = vld [vmem:[#allocation2 + $0xb8] sm:$0xff] }
  0x18   :  { %242 = vmatpush.msra.mxu3 %v122_v19  ;;  %214 = vmatpush.msra.mxu2 %v105_v21  ;;  %v118_v35 = vld [vmem:[#allocation2 + $0x1b8] sm:$0xff]  ;;  %v69_v36 = vld [vmem:[#allocation2 + $0x30] sm:$0xff]  ;;  %v68_v40 = vld [vmem:[#allocation2 + $0x28] sm:$0xff] }
  0x19   :  { %185 = vmatpush.msra.mxu1 %v89_v22  ;;  %157 = vmatpush.msra.mxu0 %v72_v24  ;;  %v101_v37 = vld [vmem:[#allocation2 + $0x130] sm:$0xff]  ;;  %v100_v41 = vld [vmem:[#allocation2 + $0x128] sm:$0xff]  ;;  %v67_v44 = vld [vmem:[#allocation2 + $0x20] sm:$0xff] }
  0x1a   :  { %243 = vmatpush.msra.mxu3 %v121_v23  ;;  %215 = vmatpush.msra.mxu2 %v104_v25  ;;  %v85_v38 = vld [vmem:[#allocation2 + $0xb0] sm:$0xff]  ;;  %v84_v42 = vld [vmem:[#allocation2 + $0xa8] sm:$0xff]  ;;  %v99_v45 = vld [vmem:[#allocation2 + $0x120] sm:$0xff] }
  0x1b   :  { %186 = vmatpush.msra.mxu1 %v88_v26  ;;  %158 = vmatpush.msra.mxu0 %v71_v28  ;;  %v117_v39 = vld [vmem:[#allocation2 + $0x1b0] sm:$0xff]  ;;  %v116_v43 = vld [vmem:[#allocation2 + $0x1a8] sm:$0xff]  ;;  %v83_v46 = vld [vmem:[#allocation2 + $0xa0] sm:$0xff] }
  0x1c   :  { %244 = vmatpush.msra.mxu3 %v120_v27  ;;  %216 = vmatpush.msra.mxu2 %v103_v29  ;;  %v115_v47 = vld [vmem:[#allocation2 + $0x1a0] sm:$0xff]  ;;  %v66_v48 = vld [vmem:[#allocation2 + $0x18] sm:$0xff]  ;;  %v65_v52 = vld [vmem:[#allocation2 + $0x10] sm:$0xff] }
  0x1d   :  { %187 = vmatpush.msra.mxu1 %v87_v30  ;;  %159 = vmatpush.msra.mxu0 %v70_v32  ;;  %v98_v49 = vld [vmem:[#allocation2 + $0x118] sm:$0xff]  ;;  %v97_v53 = vld [vmem:[#allocation2 + $0x110] sm:$0xff]  ;;  %v64_v56 = vld [vmem:[#allocation2 + $0x8] sm:$0xff] }
  0x1e   :  { %245 = vmatpush.msra.mxu3 %v119_v31  ;;  %217 = vmatpush.msra.mxu2 %v102_v33  ;;  %v82_v50 = vld [vmem:[#allocation2 + $0x98] sm:$0xff]  ;;  %v81_v54 = vld [vmem:[#allocation2 + $0x90] sm:$0xff]  ;;  %v96_v57 = vld [vmem:[#allocation2 + $0x108] sm:$0xff] }
  0x1f   :  { %188 = vmatpush.msra.mxu1 %v86_v34  ;;  %160 = vmatpush.msra.mxu0 %v69_v36  ;;  %v114_v51 = vld [vmem:[#allocation2 + $0x198] sm:$0xff]  ;;  %v113_v55 = vld [vmem:[#allocation2 + $0x190] sm:$0xff]  ;;  %v80_v58 = vld [vmem:[#allocation2 + $0x88] sm:$0xff] }
  0x20   :  { %246 = vmatpush.msra.mxu3 %v118_v35  ;;  %218 = vmatpush.msra.mxu2 %v101_v37  ;;  %v112_v59 = vld [vmem:[#allocation2 + $0x188] sm:$0xff]  ;;  %v63_v60 = vld [vmem:[#allocation2] sm:$0xff]  ;;  %v49_v63 = vld [vmem:[#allocation5 + $0x10] sm:$0xff] }
  0x21   :  { %189 = vmatpush.msra.mxu1 %v85_v38  ;;  %161 = vmatpush.msra.mxu0 %v68_v40  ;;  %v95_v61 = vld [vmem:[#allocation2 + $0x100] sm:$0xff]  ;;  %v48_v2 = vld [vmem:[#allocation5 + $0x8] sm:$0xff]  ;;  %v50_v3 = vld [vmem:[#allocation5 + $0x18] sm:$0xff] }
  0x22   :  { %247 = vmatpush.msra.mxu3 %v117_v39  ;;  %219 = vmatpush.msra.mxu2 %v100_v41  ;;  %v47_v62 = vld [vmem:[#allocation5] sm:$0xff]  ;;  %v129_v5 = vld [vmem:[%s436_s2 + $0x10] sm:$0xff]  ;;  %v52_v9 = vld [vmem:[#allocation5 + $0x28] sm:$0xff] }
  0x23   :  { %190 = vmatpush.msra.mxu1 %v84_v42  ;;  %162 = vmatpush.msra.mxu0 %v67_v44  ;;  %v79_v0 = vld [vmem:[#allocation2 + $0x80] sm:$0xff]  ;;  %v53_v8 = vld [vmem:[#allocation5 + $0x30] sm:$0xff]  ;;  %v54_v10 = vld [vmem:[#allocation5 + $0x38] sm:$0xff] }
  0x24   :  { %248 = vmatpush.msra.mxu3 %v116_v43  ;;  %220 = vmatpush.msra.mxu2 %v99_v45  ;;  %v111_v1 = vld [vmem:[#allocation2 + $0x180] sm:$0xff]  ;;  %v128_v11 = vld [vmem:[%s436_s2 + $0x8] sm:$0xff]  ;;  %v130_v12 = vld [vmem:[%s436_s2 + $0x18] sm:$0xff] }
  0x25   :  { %191 = vmatpush.msra.mxu1 %v83_v46  ;;  %163 = vmatpush.msra.mxu0 %v66_v48  ;;  %v127_v4 = vld [vmem:[%s436_s2] sm:$0xff]  ;;  %v57_v14 = vld [vmem:[#allocation5 + $0x50] sm:$0xff]  ;;  %v56_v15 = vld [vmem:[#allocation5 + $0x48] sm:$0xff]  ;;  %s386_s2 = smov [#allocation7]  }
  0x26   :  { %249 = vmatpush.msra.mxu3 %v115_v47  ;;  %221 = vmatpush.msra.mxu2 %v98_v49  ;;  %v51_v7 = vld [vmem:[#allocation5 + $0x20] sm:$0xff]  ;;  %v58_v16 = vld [vmem:[#allocation5 + $0x58] sm:$0xff]  ;;  %v61_v18 = vld [vmem:[#allocation5 + $0x70] sm:$0xff]  ;;  %s275_s5 = sshll.u32 %s386_s2, 4  ;;  %s276_s5 = int_to_ptr.vmem [resolvable:$true] %s275_s5 }
  0x27   :  { %192 = vmatpush.msra.mxu1 %v82_v50  ;;  %164 = vmatpush.msra.mxu0 %v65_v52  ;;  %v55_v13 = vld [vmem:[#allocation5 + $0x40] sm:$0xff]  ;;  %v60_v19 = vld [vmem:[#allocation5 + $0x68] sm:$0xff]  ;;  %v62_v20 = vld [vmem:[#allocation5 + $0x78] sm:$0xff] }
  0x28   :  { %250 = vmatpush.msra.mxu3 %v114_v51  ;;  %222 = vmatpush.msra.mxu2 %v97_v53  ;;  %v59_v17 = vld [vmem:[#allocation5 + $0x60] sm:$0xff] }
  0x29   :  { %193 = vmatpush.msra.mxu1 %v81_v54  ;;  %165 = vmatpush.msra.mxu0 %v64_v56 }
  0x2a   :  { %251 = vmatpush.msra.mxu3 %v113_v55  ;;  %223 = vmatpush.msra.mxu2 %v96_v57 }
  0x2b   :  { %194 = vmatpush.msra.mxu1 %v80_v58  ;;  %166 = vmatpush.msra.mxu0 %v63_v60 }
  0x2c   :  { %252 = vmatpush.msra.mxu3 %v112_v59  ;;  %224 = vmatpush.msra.mxu2 %v95_v61 }
  0x2d   :  { %167 = vmatmul.f32.vlgmr.msra.gmra.mxu0 %v47_v62  ;;  %225 = vmatmul.f32.vlgmr.msra.gmra.mxu2 %v49_v63 }
  0x2e   :  { %195 = vmatpush.msra.mxu1 %v79_v0  ;;  %253 = vmatpush.msra.mxu3 %v111_v1 }
  0x2f   :  { %196 = vmatmul.f32.vlgmr.msra.gmra.mxu1 %v48_v2  ;;  %254 = vmatmul.f32.vlgmr.msra.gmra.mxu3 %v50_v3 }
  0x30   :  { %299 = vset.pattern.permute.xlu0 %v385_v6  ;;  %300 = vset.pattern.permute.xlu1 %v385_v6 }
  0x31   :  { %133 = vperm.xlu0 %299, %v127_v4   ;;  %143 = vperm.xlu1 %300, %v129_v5  }
  0x35   :  { %170 = vmatmul.f32.gmra.mxu0 %v51_v7  ;;  %228 = vmatmul.f32.gmra.mxu2 %v53_v8 }
  0x37   :  { %199 = vmatmul.f32.gmra.mxu1 %v52_v9  ;;  %257 = vmatmul.f32.gmra.mxu3 %v54_v10 }
  0x39   :  { %138 = vperm.xlu0 %299, %v128_v11   ;;  %148 = vperm.xlu1 %300, %v130_v12  }
  0x3d   :  { %173 = vmatmul.f32.gmra.mxu0 %v55_v13  ;;  %231 = vmatmul.f32.gmra.mxu2 %v57_v14 }
  0x3f   :  { %202 = vmatmul.f32.gmra.mxu1 %v56_v15  ;;  %260 = vmatmul.f32.gmra.mxu3 %v58_v16 }
  0x45   :  { %176 = vmatmul.f32.gmra.mxu0 %v59_v17  ;;  %234 = vmatmul.f32.gmra.mxu2 %v61_v18 }
  0x47   :  { %205 = vmatmul.f32.gmra.mxu1 %v60_v19  ;;  %263 = vmatmul.f32.gmra.mxu3 %v62_v20 }
  0xa3   :  { %v134_v21 = vpop.permute.xlu0 %133  ;;  %v144_v35 = vpop.permute.xlu1 %143 }
  0xaa   :  { %v168_v22 = vpop.f32.mrf.mxu0 }
  0xab   :  { %v169_v23 = vadd.f32 %v168_v22, %v134_v21  ;;  %v139_v27 = vpop.permute.xlu0 %138  ;;  %v149_v45 = vpop.permute.xlu1 %148 }
  0xac   :  { %v197_v24 = vpop.f32.mrf.mxu1 }
  0xad   :  { %v198_v25 = vadd.f32 %v197_v24, %v169_v23 }
  0xb0   :  { %v226_v26 = vpop.f32.mrf.mxu2 }
  0xb1   :  { %v227_v28 = vadd.f32 %v226_v26, %v198_v25 }
  0xb2   :  { %v171_v29 = vpop.f32.mrf.mxu0  ;;  %v255_v30 = vpop.f32.mrf.mxu3 }
  0xb3   :  { %v256_v31 = vadd.f32 %v255_v30, %v227_v28  ;;  %v172_v32 = vadd.f32 %v171_v29, %v139_v27 }
  0xb4   :  { %v200_v33 = vpop.f32.mrf.mxu1 }
  0xb5   :  { %267 = vst [vmem:[#allocation7] sm:$0xff] %v256_v31  ;;  %v201_v34 = vadd.f32 %v200_v33, %v172_v32 }
  0xb8   :  { %v229_v36 = vpop.f32.mrf.mxu2 }
  0xb9   :  { %v230_v37 = vadd.f32 %v229_v36, %v201_v34 }
  0xba   :  { %v174_v38 = vpop.f32.mrf.mxu0  ;;  %v258_v39 = vpop.f32.mrf.mxu3 }
  0xbb   :  { %v175_v40 = vadd.f32 %v174_v38, %v144_v35  ;;  %v259_v41 = vadd.f32 %v258_v39, %v230_v37 }
  0xbc   :  { %v203_v42 = vpop.f32.mrf.mxu1 }
  0xbd   :  { %268 = vst [vmem:[#allocation7 + $0x8] sm:$0xff] %v259_v41  ;;  %v204_v43 = vadd.f32 %v203_v42, %v175_v40 }
  0xc0   :  { %v232_v44 = vpop.f32.mrf.mxu2 }
  0xc1   :  { %v233_v46 = vadd.f32 %v232_v44, %v204_v43 }
  0xc2   :  { %v177_v47 = vpop.f32.mrf.mxu0  ;;  %v261_v48 = vpop.f32.mrf.mxu3 }
  0xc3   :  { %v178_v49 = vadd.f32 %v177_v47, %v149_v45  ;;  %v262_v50 = vadd.f32 %v261_v48, %v233_v46 }
  0xc4   :  { %v206_v51 = vpop.f32.mrf.mxu1 }
  0xc5   :  { %269 = vst [vmem:[#allocation7 + $0x10] sm:$0xff] %v262_v50  ;;  %v207_v52 = vadd.f32 %v206_v51, %v178_v49 }
  0xc8   :  { %v235_v53 = vpop.f32.mrf.mxu2 }
  0xc9   :  { %v236_v54 = vadd.f32 %v235_v53, %v207_v52 }
  0xca   :  { %v264_v55 = vpop.f32.mrf.mxu3 }
  0xcb   :  { %v265_v56 = vadd.f32 %v264_v55, %v236_v54 }
  0xcd   :  { %270 = vst [vmem:[#allocation7 + $0x18] sm:$0xff] %v265_v56 }
  0xce   :  { %283 = dma.vmem_to_hbm [thread:$0]  %s276_s5, 512, %s278_s8, [#allocation4], %s380_s20, %s380_s20, %s381_s21  }
  0xcf   :  { %377 = dma.done.wait [#allocation4], 512  }
  0xd0   :  { %378 = vsyncadd [#allocation4], 4294966784 }
  0xd1   :  { %288 = vsyncpa [#allocation3], 1 }
  0xd2   :  { %289 = vsyncpa [#allocation6], 1 }
  0xd3   :  { %290 = vsyncpa [#allocation4], 1 }

</bundles_post_ra>
